<compile_context>
chip_gen: v7x
topology: tpu7x:2x2x1
jax: 0.10.0
libtpu: 0.0.40
codegen_flags: <defaults>
</compile_context>

<pallas_src>
import math

import jax
import jax.numpy as jnp
from jax.experimental import pallas as pl
from jax.experimental.pallas import tpu as pltpu


def _round_up(x, m):
    return ((x + m - 1) // m) * m


def _time_encoding_kernel(t_ref, w_ref, b_ref, o_ref):
    # t_ref: (TILE_N, 1), w_ref: (1, TILE_D), b_ref: (1, TILE_D)
    # o_ref: (TILE_N, TILE_D)
    # One broadcast fma (VPU) + one cos (EUP) per element; keep off the MXU.
    o_ref[...] = jnp.cos(t_ref[...] * w_ref[...] + b_ref[...]).astype(o_ref.dtype)


def _time_encoding_jnp(t_col, w_row, b_row, out_dtype):
    return jnp.cos(t_col * w_row + b_row).astype(out_dtype)


def time_encoding(t, weight, bias, *, tile_n=512, tile_d=1024,
                  out_dtype=jnp.float32, min_pallas_elements=1 << 14,
                  force_pallas=False):
    """Pallas equivalent of TimeEncoding.forward.

    Args:
      t:      (N,) or (N, 1) array of timestamps (any float/int dtype).
      weight: (D, 1) Linear weight (PyTorch layout).
      bias:   (D,) Linear bias.
      tile_n: rows of output per grid step (clamped / rounded to 8).
      tile_d: lane-width of output per grid step (clamped / rounded to 128).
      out_dtype: output dtype (float32 matches torch; bfloat16 halves HBM
        store traffic if the consumer accepts it).
      min_pallas_elements: below this N*D, fall back to plain jnp (launch
        overhead dominates for tiny outputs).
      force_pallas: always take the Pallas path (used for testing).

    Returns:
      (N, D) array: cos(t @ weight.T + bias)
    """
    t = jnp.asarray(t, jnp.float32)
    if t.ndim == 1:
        t = t[:, None]                                     # (N, 1)
    n = int(t.shape[0])
    d = int(weight.shape[0])

    w_row = jnp.asarray(weight, jnp.float32).reshape(1, d)  # (1, D)
    b_row = jnp.asarray(bias, jnp.float32).reshape(1, d)    # (1, D)

    if (not force_pallas) and n * d < min_pallas_elements:
        # Tiny problem: let XLA fuse the elementwise expression directly.
        return _time_encoding_jnp(t, w_row, b_row, out_dtype)

    # Lane-dense output: D tile is a multiple of 128; N tile a multiple of 8.
    tile_d = min(tile_d, _round_up(d, 128))
    tile_d = _round_up(tile_d, 128)
    d_pad = _round_up(d, tile_d)

    tile_n = min(tile_n, _round_up(n, 8))
    tile_n = _round_up(tile_n, 8)
    n_pad = _round_up(n, tile_n)

    # Explicit padding keeps every block full-size (no partial-tile hazards);
    # the padded region is sliced off after the call.
    t_p = jnp.pad(t, ((0, n_pad - n), (0, 0)))
    w_p = jnp.pad(w_row, ((0, 0), (0, d_pad - d)))
    b_p = jnp.pad(b_row, ((0, 0), (0, d_pad - d)))

    grid = (n_pad // tile_n, d_pad // tile_d)

    out = pl.pallas_call(
        _time_encoding_kernel,
        out_shape=jax.ShapeDtypeStruct((n_pad, d_pad), out_dtype),
        grid_spec=pltpu.PrefetchScalarGridSpec(
            num_scalar_prefetch=0,
            grid=grid,
            in_specs=[
                # timestamps: tile over N only
                pl.BlockSpec((tile_n, 1), lambda i, j: (i, 0)),
                # weight / bias rows: resident per D-tile (same block across i)
                pl.BlockSpec((1, tile_d), lambda i, j: (0, j)),
                pl.BlockSpec((1, tile_d), lambda i, j: (0, j)),
            ],
            out_specs=pl.BlockSpec((tile_n, tile_d), lambda i, j: (i, j)),
        ),
        compiler_params=pltpu.CompilerParams(
            dimension_semantics=("parallel", "parallel")),
    )(t_p, w_p, b_p)

    return out[:n, :d]


def init_time_encoding_params(key, dimension):
    """Parameter init matching the PyTorch module:
    weight: xavier_uniform for Linear(1, dimension) -> shape (dimension, 1)
    bias:   zeros -> shape (dimension,)
    """
    fan_in, fan_out = 1, dimension
    bound = math.sqrt(6.0 / (fan_in + fan_out))
    weight = jax.random.uniform(
        key, (dimension, 1), minval=-bound, maxval=bound, dtype=jnp.float32)
    bias = jnp.zeros((dimension,), jnp.float32)
    return weight, bias


if __name__ == "__main__":
    key = jax.random.PRNGKey(0)
    k_w, k_t, k_t2 = jax.random.split(key, 3)

    # Small example consistent with the module: hidden=32, 16 timestamps.
    dimension = 32
    n = 16
    weight, bias = init_time_encoding_params(k_w, dimension)
    t = jax.random.uniform(k_t, (n,), minval=0.0, maxval=100.0,
                           dtype=jnp.float32)

    out = time_encoding(t, weight, bias, force_pallas=True)
    out = jax.block_until_ready(out)
    ref = jnp.cos(t[:, None] * weight.reshape(1, -1) + bias[None, :])
    assert out.shape == (n, dimension)
    assert jnp.allclose(out, ref, atol=1e-5, rtol=1e-5)

    # Second check: shapes that are NOT tile multiples exercise the
    # padding path and the 2-D (N, D) tiling with multiple grid steps.
    d2, n2 = 160, 300
    w2, b2 = init_time_encoding_params(k_w, d2)
    t2 = jax.random.uniform(k_t2, (n2,), minval=0.0, maxval=100.0,
                            dtype=jnp.float32)
    out2 = jax.block_until_ready(
        time_encoding(t2, w2, b2, tile_n=128, tile_d=128, force_pallas=True))
    ref2 = jnp.cos(t2[:, None] * w2.reshape(1, -1) + b2[None, :])
    assert out2.shape == (n2, d2)
    assert jnp.allclose(out2, ref2, atol=1e-5, rtol=1e-5)

    # Tiny-size fast path (no Pallas) still matches.
    out3 = jax.block_until_ready(time_encoding(t, weight, bias))
    assert jnp.allclose(out3, ref, atol=1e-5, rtol=1e-5)

    print("KERNEL_OK")
</pallas_src>

<mosaic_0001>
module attributes {stable_mosaic.version = 11 : i64} {
  func.func @_time_encoding_kernel(%arg0: i32, %arg1: i32, %arg2: memref<16x1xf32, #tpu.memory_space<vmem>>, %arg3: memref<1x128xf32, #tpu.memory_space<vmem>>, %arg4: memref<1x128xf32, #tpu.memory_space<vmem>>, %arg5: memref<16x128xf32, #tpu.memory_space<vmem>>) attributes {dimension_semantics = [#tpu.dimension_semantics<parallel>, #tpu.dimension_semantics<parallel>], iteration_bounds = array<i64: 1, 1>, scalar_prefetch = 0 : i64, scratch_operands = 0 : i64, tpu.core_type = #tpu.core_type<tc>, window_params = [{transform_indices = @transform_0, window_bounds = array<i64: 16, 1>}, {transform_indices = @transform_1, window_bounds = array<i64: 1, 128>}, {transform_indices = @transform_2, window_bounds = array<i64: 1, 128>}, {transform_indices = @transform_3, window_bounds = array<i64: 16, 128>}]} {
    %c0 = arith.constant 0 : index
    %c0_0 = arith.constant 0 : index
    %0 = vector.load %arg2[%c0, %c0_0] : memref<16x1xf32, #tpu.memory_space<vmem>>, vector<16x1xf32>
    %c0_1 = arith.constant 0 : index
    %c0_2 = arith.constant 0 : index
    %1 = vector.load %arg3[%c0_1, %c0_2] : memref<1x128xf32, #tpu.memory_space<vmem>>, vector<1x128xf32>
    %2 = vector.broadcast %0 : vector<16x1xf32> to vector<16x128xf32>
    %3 = vector.broadcast %1 : vector<1x128xf32> to vector<16x128xf32>
    %4 = arith.mulf %2, %3 : vector<16x128xf32>
    %c0_3 = arith.constant 0 : index
    %c0_4 = arith.constant 0 : index
    %5 = vector.load %arg4[%c0_3, %c0_4] : memref<1x128xf32, #tpu.memory_space<vmem>>, vector<1x128xf32>
    %6 = vector.broadcast %5 : vector<1x128xf32> to vector<16x128xf32>
    %7 = arith.addf %4, %6 : vector<16x128xf32>
    %8 = math.cos %7 : vector<16x128xf32>
    %c0_5 = arith.constant 0 : index
    %c0_6 = arith.constant 0 : index
    %9 = vector.load %arg5[%c0_5, %c0_6] : memref<16x128xf32, #tpu.memory_space<vmem>>, vector<16x128xf32>
    tpu.vector_store %arg5[%c0_5, %c0_6], %8 {strides = array<i32>} : memref<16x128xf32, #tpu.memory_space<vmem>>, vector<16x128xf32>,
    return
  }
  func.func @transform_0(%arg0: i32, %arg1: i32) -> (i32, i32) {
    %c0_i32 = arith.constant 0 : i32
    %c0_i32_0 = arith.constant 0 : i32
    return %arg0, %c0_i32 : i32, i32
  }
  func.func @transform_1(%arg0: i32, %arg1: i32) -> (i32, i32) {
    %c0_i32 = arith.constant 0 : i32
    %c0_i32_0 = arith.constant 0 : i32
    return %c0_i32, %arg1 : i32, i32
  }
  func.func @transform_2(%arg0: i32, %arg1: i32) -> (i32, i32) {
    %c0_i32 = arith.constant 0 : i32
    %c0_i32_0 = arith.constant 0 : i32
    return %c0_i32, %arg1 : i32, i32
  }
  func.func @transform_3(%arg0: i32, %arg1: i32) -> (i32, i32) {
    %c0_i32 = arith.constant 0 : i32
    return %arg0, %arg1 : i32, i32
  }
}

</mosaic_0001>

<bundles_post_ra>
// kernel: tpu_custom_call.1
= control target key start
LH: loop header
LB: loop body
LE: loop exit
PB: predicated region body
PF: predicated region fallthrough
CT: control target
= control target key end

     0   :  { %v330_v1 = vmov 0   ;;  %s460_s0 = inlined_call_operand.vmem [shape: f32[16,1], index: 0, kind: input, shape index: {}]   ;;  %s461_s1 = inlined_call_operand.vmem [shape: f32[1,128], index: 1, kind: input, shape index: {}]   ;;  %s462_s2 = inlined_call_operand.vmem [shape: f32[1,128], index: 2, kind: input, shape index: {}]   ;;  %s463_s3 = inlined_call_operand.hbm [shape: f32[16,128], index: 3, kind: output, shape index: {}]  }
   0x1   :  { %v15_v0 = vld [vmem:[%s460_s0] sm:$0xff]  ;;  %297 = vset.pattern.permute.xlu0 %v330_v1  ;;  %v16_v2 = vld [vmem:[%s460_s0 + $0x8] sm:$0xff] }
   0x2   :  { %20 = vperm.xlu0 %297, %v15_v0  }
   0x3   :  { %8 = vsyncpa [#allocation3], 0  ;;  %v269_v3 = vld [vmem:[%s461_s1] ss:$0 sm:$0xff]  ;;  %v331_v27 = vmov 683565275  }
   0x4   :  { %v270_v4 = vld [vmem:[%s462_s2] ss:$0 sm:$0xff]  ;;  %v332_v31 = vmov 2475754826   ;;  %v333_v33 = vmov 2131351028  }
   0x5   :  { %v334_v35 = vmov 2102212464   ;;  %v335_v37 = vmov 920167782   ;;  %v336_v44 = vmov 1326507024  }
   0x6   :  { %25 = vperm.xlu0 %297, %v16_v2   ;;  %s337_s0 = smov [#allocation2]  }
   0x7   :  { %s258_s1 = sshll.u32 %s337_s0, 4  ;;  %s259_s1 = int_to_ptr.vmem [resolvable:$true] %s258_s1 }
   0x8   :  { %s306_s2 = scalar_lea.vmem %s259_s1, 256  ;;  %p311_p1 = scmp.lt.s32.totalorder %s259_s1, %s259_s1 }
   0x9   :  { %p307_p0 = scmp.ne.s32.totalorder %s259_s1, %s306_s2  ;;  %p312_p2 = scmp.lt.s32.totalorder %s306_s2, %s306_s2 }
   0xb   :  { %p313_p3 = por %p312_p2, %p311_p1 }
   0xd   :  { %p314_p4 = pnand %p313_p3, %p307_p0 }
  0x81   :  { %v21_v5 = vpop.permute.xlu0 %20 }
  0x82   :  { %v34_v6 = vmul.f32 %v269_v3, %v21_v5 }
  0x84   :  { %v372_v7 = vadd.f32 %v270_v4, %v34_v6 }
  0x85   :  { %v26_v8 = vpop.permute.xlu0 %25 }
  0x86   :  { %v45_v9 = vand.u32 2147483647, %v372_v7  ;;  %v48_v10 = vand.u32 2139095040, %v372_v7  ;;  %v35_v11 = vmul.f32 %v269_v3, %v26_v8  ;;  %vm47_vm14 = vcmp.lt.s32.totalorder %v372_v7, 0 }
  0x88   :  { %v49_v12 = vshrl.u32 %v48_v10, 23  ;;  %v376_v13 = vadd.f32 %v270_v4, %v35_v11  ;;  %v52_v14 = vand.u32 8388607, %v45_v9  ;;  %vm425_vm15 = vcmp.le.f32.partialorder %v45_v9, 0.7853982 }
  0x8a   :  { %v271_v15 = vadd.s32 4294967169, %v49_v12  ;;  %v151_v16 = vand.u32 2139095040, %v376_v13  ;;  %v53_v18 = vor.u32 8388608, %v52_v14  ;;  %v148_v20 = vand.u32 2147483647, %v376_v13 }
  0x8c   :  { %v55_v17 = vadd.s32 1, %v271_v15  ;;  %v152_v19 = vshrl.u32 %v151_v16, 23  ;;  %v382_v25 = vshll.u32 %v53_v18, 8  ;;  %v155_v29 = vand.u32 8388607, %v148_v20 }
  0x8e   :  { %vm56_vm0 = vcmp.gt.s32.totalorder %v55_v17, 0  ;;  %v275_v22 = vadd.s32 4294967169, %v152_v19  ;;  %v156_v59 = vor.u32 8388608, %v155_v29 }
  0x8f   :  { %v57_v21 = vsel %vm56_vm0, %v55_v17, 0  ;;  %vm150_vm0 = vcmp.lt.s32.totalorder %v376_v13, 0 }
  0x90   :  { %v58_v23 = vshrl.u32 %v57_v21, 5  ;;  %v59_v24 = vand.u32 31, %v57_v21  ;;  %v158_v30 = vadd.s32 1, %v275_v22  ;;  %v196_v10 = vshll.u32 %v156_v59, 8 }
  0x92   :  { %v60_v26 = vsub.s32 32, %v59_v24  ;;  %v62_v28 = vshll.u32 %v331_v27, %v59_v24  ;;  %v65_v32 = vshll.u32 %v332_v31, %v59_v24  ;;  %v68_v34 = vshll.u32 %v333_v33, %v59_v24 }
  0x93   :  { %v71_v36 = vshll.u32 %v334_v35, %v59_v24  ;;  %v74_v38 = vshll.u32 %v335_v37, %v59_v24  ;;  %vm77_vm1 = vcmp.lt.s32.totalorder %v58_v23, 1  ;;  %vm79_vm2 = vcmp.lt.s32.totalorder %v58_v23, 3 }
  0x94   :  { %v63_v39 = vshrl.u32 %v332_v31, %v60_v26  ;;  %v66_v40 = vshrl.u32 %v333_v33, %v60_v26  ;;  %v69_v41 = vshrl.u32 %v334_v35, %v60_v26  ;;  %v61_v42 = vshrl.u32 %v331_v27, %v60_v26 }
  0x95   :  { %v72_v43 = vshrl.u32 %v335_v37, %v60_v26  ;;  %v75_v45 = vshrl.u32 %v336_v44, %v60_v26  ;;  %vm159_vm3 = vcmp.gt.s32.totalorder %v158_v30, 0  ;;  %vm80_vm4 = vcmp.lt.s32.totalorder %v58_v23, 4 }
  0x96   :  { %v64_v46 = vor.u32 %v63_v39, %v62_v28  ;;  %v67_v47 = vor.u32 %v66_v40, %v65_v32  ;;  %v70_v48 = vor.u32 %v69_v41, %v68_v34  ;;  %v160_v51 = vsel %vm159_vm3, %v158_v30, 0 }
  0x97   :  { %v73_v49 = vor.u32 %v72_v43, %v71_v36  ;;  %v76_v50 = vor.u32 %v75_v45, %v74_v38  ;;  %vm78_vm5 = vcmp.lt.s32.totalorder %v58_v23, 2  ;;  %v162_v62 = vand.u32 31, %v160_v51 }
  0x98   :  { %v81_v52 = vsel %vm77_vm1, %v61_v42, %v64_v46  ;;  %v82_v53 = vsel %vm80_vm4, %v70_v48, 2102212464  ;;  %v85_v54 = vsel %vm77_vm1, %v64_v46, %v67_v47  ;;  %v89_v55 = vsel %vm77_vm1, %v67_v47, %v70_v48 }
  0x99   :  { %v83_v56 = vsel %vm79_vm2, %v67_v47, %v82_v53  ;;  %v86_v57 = vsel %vm80_vm4, %v73_v49, 920167782  ;;  %v90_v58 = vsel %vm80_vm4, %v76_v50, 1326507024  ;;  %v161_v6 = vshrl.u32 %v160_v51, 5 }
  0x9a   :  { %v87_v60 = vsel %vm79_vm2, %v70_v48, %v86_v57  ;;  %v91_v61 = vsel %vm79_vm2, %v73_v49, %v90_v58  ;;  %v84_v63 = vsel %vm78_vm5, %v81_v52, %v83_v56  ;;  %v163_v8 = vsub.s32 32, %v162_v62 }
  0x9b   :  { %v88_v0 = vsel %vm78_vm5, %v85_v54, %v87_v60  ;;  %v92_v1 = vsel %vm78_vm5, %v89_v55, %v91_v61  ;;  %v100_v11 = vmul.u32 %v382_v25, %v84_v63  ;;  %v165_v12 = vshll.u32 %v331_v27, %v162_v62 }
  0x9c   :  { %v395_v2 = vmul.u32.u64.low %v382_v25, %v92_v1  ;;  %v396_v3 = vmul.u32.u64.high %v382_v25, %v92_v1, %v395_v2  ;;  %v399_v4 = vmul.u32.u64.low %v382_v25, %v88_v0  ;;  %v400_v5 = vmul.u32.u64.high %v382_v25, %v88_v0, %v399_v4 }
  0x9d   :  { %v168_v14 = vshll.u32 %v332_v31, %v162_v62  ;;  %v171_v15 = vshll.u32 %v333_v33, %v162_v62  ;;  %v166_v16 = vshrl.u32 %v332_v31, %v163_v8  ;;  %v169_v17 = vshrl.u32 %v333_v33, %v163_v8 }
  0x9e   :  { %v172_v18 = vshrl.u32 %v334_v35, %v163_v8  ;;  %v174_v19 = vshll.u32 %v334_v35, %v162_v62  ;;  %vm102_vm6 = vc.u32 %v396_v3, %v399_v4  ;;  %v103_v21 = vadd.s32 1, %v400_v5 }
  0x9f   :  { %v175_v22 = vshrl.u32 %v335_v37, %v163_v8  ;;  %v177_v23 = vshll.u32 %v335_v37, %v162_v62  ;;  %v167_v24 = vor.u32 %v166_v16, %v165_v12  ;;  %v170_v26 = vor.u32 %v169_v17, %v168_v14 }
  0xa0   :  { %v173_v28 = vor.u32 %v172_v18, %v171_v15  ;;  %v178_v29 = vshrl.u32 %v336_v44, %v163_v8  ;;  %v104_v25 = vsel %vm102_vm6, %v103_v21, %v400_v5  ;;  %vm180_vm7 = vcmp.lt.s32.totalorder %v161_v6, 1 }
  0xa1   :  { %v176_v30 = vor.u32 %v175_v22, %v174_v19  ;;  %vm183_vm8 = vcmp.lt.s32.totalorder %v161_v6, 4  ;;  %v105_v31 = vadd.s32 %v104_v25, %v100_v11  ;;  %vm182_vm9 = vcmp.lt.s32.totalorder %v161_v6, 3 }
  0xa2   :  { %v179_v32 = vor.u32 %v178_v29, %v177_v23  ;;  %v185_v33 = vsel %vm183_vm8, %v173_v28, 2102212464  ;;  %v164_v34 = vshrl.u32 %v331_v27, %v163_v8  ;;  %v188_v35 = vsel %vm180_vm7, %v167_v24, %v170_v26 }
  0xa3   :  { %v189_v36 = vsel %vm183_vm8, %v176_v30, 920167782  ;;  %v192_v38 = vsel %vm180_vm7, %v170_v26, %v173_v28  ;;  %v106_v39 = vadd.s32 536870912, %v105_v31  ;;  %vm181_vm10 = vcmp.lt.s32.totalorder %v161_v6, 2 }
  0xa4   :  { %v190_v37 = vsel %vm182_vm9, %v173_v28, %v189_v36  ;;  %v193_v40 = vsel %vm183_vm8, %v179_v32, 1326507024  ;;  %v184_v41 = vsel %vm180_vm7, %v164_v34, %v167_v24  ;;  %v186_v42 = vsel %vm182_vm9, %v170_v26, %v185_v33 }
  0xa5   :  { %v191_v43 = vsel %vm181_vm10, %v188_v35, %v190_v37  ;;  %v194_v44 = vsel %vm182_vm9, %v176_v30, %v193_v40  ;;  %v107_v45 = vshrl.u32 %v106_v39, 30  ;;  %v187_v51 = vsel %vm181_vm10, %v184_v41, %v186_v42 }
  0xa6   :  { %v195_v46 = vsel %vm181_vm10, %v192_v38, %v194_v44  ;;  %v410_v47 = vmul.u32.u64.low %v196_v10, %v191_v43  ;;  %v411_v48 = vmul.u32.u64.high %v196_v10, %v191_v43, %v410_v47  ;;  %v203_v54 = vmul.u32 %v196_v10, %v187_v51 }
  0xa7   :  { %v413_v49 = vmul.u32.u64.low %v196_v10, %v195_v46  ;;  %v414_v50 = vmul.u32.u64.high %v196_v10, %v195_v46, %v413_v49  ;;  %v108_v27 = vshll.u32 %v107_v45, 30  ;;  %v101_v2 = vadd.s32 %v399_v4, %v396_v3 }
  0xa8   :  { %v206_v53 = vadd.s32 1, %v411_v48  ;;  %v131_v33 = vsub.s32 4, %v107_v45  ;;  %vm437_vm1 = vcmp.le.f32.partialorder %v148_v20, 0.7853982  ;;  %vm137_vm5 = vweird.f32 %v372_v7 }
  0xa9   :  { %v109_v52 = vsub.s32 %v105_v31, %v108_v27  ;;  %vm205_vm11 = vc.u32 %v414_v50, %v410_v47  ;;  %v204_v26 = vadd.s32 %v410_v47, %v414_v50  ;;  %vm240_vm9 = vweird.f32 %v376_v13 }
  0xaa   :  { %v207_v56 = vsel %vm205_vm11, %v206_v53, %v411_v48  ;;  %v132_v39 = vsel %vm47_vm14, %v131_v33, %v107_v45 }
  0xab   :  { %v111_v55 = vsub.s32 0, %v109_v52  ;;  %v208_v57 = vadd.s32 %v207_v56, %v203_v54  ;;  %v134_v9 = vsel %vm425_vm15, 0, %v132_v39 }
  0xac   :  { %v138_v43 = vand.u32 3, %v134_v9 }
  0xad   :  { %v272_v58 = vmin.u32 %v111_v55, %v109_v52  ;;  %v209_v59 = vadd.s32 536870912, %v208_v57 }
  0xae   :  { %vm143_vm2 = vcmp.eq.s32.totalorder %v138_v43, 2  ;;  %vm140_vm3 = vcmp.eq.s32.totalorder %v138_v43, 0  ;;  %vm139_vm4 = vcmp.lt.s32.totalorder %v138_v43, 2 }
  0xaf   :  { %v113_v60 = vclz %v272_v58  ;;  %v210_v61 = vshrl.u32 %v209_v59, 30 }
  0xb1   :  { %v273_v62 = vadd.s32 4294967294, %v113_v60  ;;  %v211_v63 = vshll.u32 %v210_v61, 30  ;;  %v234_v47 = vsub.s32 4, %v210_v61 }
  0xb3   :  { %vm274_vm12 = vcmp.lt.s32.totalorder %v273_v62, 0  ;;  %v212_v1 = vsub.s32 %v208_v57, %v211_v63  ;;  %v235_v51 = vsel %vm150_vm0, %v234_v47, %v210_v61 }
  0xb4   :  { %v116_v0 = vsel %vm274_vm12, 0, %v273_v62  ;;  %v237_v55 = vsel %vm437_vm1, 0, %v235_v51 }
  0xb5   :  { %v117_v5 = vsub.s32 32, %v116_v0  ;;  %v121_v6 = vsub.s32 4294967266, %v116_v0  ;;  %v214_v8 = vsub.s32 0, %v212_v1  ;;  %v118_v10 = vshll.u32 %v109_v52, %v116_v0 }
  0xb6   :  { %v241_v56 = vand.u32 3, %v237_v55 }
  0xb7   :  { %v119_v11 = vshrl.u32 %v101_v2, %v117_v5  ;;  %v122_v12 = vadd.s32 127, %v121_v6  ;;  %v276_v14 = vmin.u32 %v214_v8, %v212_v1 }
  0xb8   :  { %vm246_vm6 = vcmp.eq.s32.totalorder %v241_v56, 2  ;;  %vm243_vm7 = vcmp.eq.s32.totalorder %v241_v56, 0  ;;  %vm242_vm8 = vcmp.lt.s32.totalorder %v241_v56, 2 }
  0xb9   :  { %v120_v15 = vor.u32 %v119_v11, %v118_v10  ;;  %v123_v16 = vshll.u32 %v122_v12, 23  ;;  %v216_v17 = vclz %v276_v14 }
  0xbb   :  { %v124_v18 = vor.u32 4788187, %v123_v16  ;;  %v277_v19 = vadd.s32 4294967294, %v216_v17  ;;  %v127_v22 = vcvt.s32.f32 %v120_v15 }
  0xbd   :  { %v125_v21 = vand.u32 2147483647, %v124_v18  ;;  %vm278_vm13 = vcmp.lt.s32.totalorder %v277_v19, 0 }
  0xbe   :  { %v219_v24 = vsel %vm278_vm13, 0, %v277_v19 }
  0xbf   :  { %v128_v23 = vmul.f32 %v127_v22, %v125_v21  ;;  %v220_v3 = vsub.s32 32, %v219_v24  ;;  %v224_v4 = vsub.s32 4294967266, %v219_v24  ;;  %v221_v29 = vshll.u32 %v212_v1, %v219_v24 }
  0xc1   :  { %v129_v28 = vxor.u32 2147483648, %v128_v23  ;;  %v222_v25 = vshrl.u32 %v204_v26, %v220_v3  ;;  %v225_v30 = vadd.s32 127, %v224_v4 }
  0xc3   :  { %v130_v32 = vsel %vm47_vm14, %v129_v28, %v128_v23  ;;  %v223_v35 = vor.u32 %v222_v25, %v221_v29  ;;  %v226_v36 = vshll.u32 %v225_v30, 23 }
  0xc4   :  { %v133_v34 = vsel %vm425_vm15, %v372_v7, %v130_v32 }
  0xc5   :  { %298 = vcosq.f32 %v133_v34  ;;  %v227_v38 = vor.u32 4788187, %v226_v36  ;;  %v230_v40 = vcvt.s32.f32 %v223_v35 }
  0xc6   :  { %300 = vsinq.f32 %v133_v34 }
  0xc7   :  { %v228_v37 = vand.u32 2147483647, %v227_v38 }
  0xc9   :  { %v231_v41 = vmul.f32 %v230_v40, %v228_v37 }
  0xcb   :  { %v232_v42 = vxor.u32 2147483648, %v231_v41 }
  0xcd   :  { %v233_v46 = vsel %vm150_vm0, %v232_v42, %v231_v41 }
  0xce   :  { %v236_v45 = vsel %vm437_vm1, %v376_v13, %v233_v46 }
  0xcf   :  { %v299_v48 = vpop.eup %298  ;;  %302 = vcosq.f32 %v236_v45 }
  0xd0   :  { %v301_v49 = vpop.eup %300  ;;  %v144_v50 = vxor.u32 2147483648, %v299_v48  ;;  %304 = vsinq.f32 %v236_v45 }
  0xd1   :  { %v141_v27 = vxor.u32 2147483648, %v301_v49 }
  0xd2   :  { %v145_v52 = vsel %vm143_vm2, %v144_v50, %v301_v49 }
  0xd3   :  { %v142_v20 = vsel %vm140_vm3, %v299_v48, %v141_v27 }
  0xd4   :  { %v146_v53 = vsel %vm139_vm4, %v142_v20, %v145_v52 }
  0xd5   :  { %v147_v54 = vsel %vm137_vm5, nan, %v146_v53 }
  0xd6   :  { %251 = vst [vmem:[#allocation2] sm:$0xff] %v147_v54 }
  0xd9   :  { %v303_v57 = vpop.eup %302 }
  0xda   :  { %v305_v58 = vpop.eup %304  ;;  %v247_v59 = vxor.u32 2147483648, %v303_v57 }
  0xdb   :  { %v244_v60 = vxor.u32 2147483648, %v305_v58 }
  0xdc   :  { %v248_v61 = vsel %vm246_vm6, %v247_v59, %v305_v58 }
  0xdd   :  { %v245_v62 = vsel %vm243_vm7, %v303_v57, %v244_v60 }
  0xde   :  { %v249_v7 = vsel %vm242_vm8, %v245_v62, %v248_v61 }
  0xdf   :  { %v250_v63 = vsel %vm240_vm9, nan, %v249_v7 }
  0xe0   :  { %252 = vst [vmem:[#allocation2 + $0x8] sm:$0xff] %v250_v63 }
  0xe1   :  { %317 = shalt.err (!%p314_p4)
}
  0xe2   :  { %s318_s22 = scalar_lea.hbm %s463_s3, 256 }
  0xe3   :  { %p319_p5 = scmp.ne.s32.totalorder %s463_s3, %s318_s22  ;;  %p322_p6 = scmp.lt.u32.totalorder %s318_s22, %s463_s3 }
  0xe5   :  { %p324_p7 = pnand %p322_p6, %p319_p5 }
  0xe7   :  { %327 = shalt.err (!%p324_p7)
}
  0xe8   :  { %s338_s27 = smov 128   ;;  %s339_s28 = smov 8  }
  0xe9   :  { %264 = dma.vmem_to_hbm [thread:$0]  %s259_s1, 256, %s463_s3, [#allocation3], %s338_s27, %s338_s27, %s339_s28  }
  0xea   :  { %328 = dma.done.wait [#allocation3], 256  }
  0xeb   :  { %329 = vsyncadd [#allocation3], 4294967040 }
  0xec   :  { %268 = vsyncpa [#allocation3], 1 }

</bundles_post_ra>
